<compile_context>
chip_gen: v7x
topology: tpu7x:2x2x1
jax: 0.10.0
libtpu: 0.0.40
codegen_flags: <defaults>
</compile_context>

<pallas_src>
import jax
import jax.numpy as jnp
from jax.experimental import pallas as pl
from jax.experimental.pallas import tpu as pltpu

_LANE = 128
_SUBLANE = 8
_NEG_BIG = -1e30  # pad-class bias: exp(pad - max) underflows to exactly 0


def _round_up(v, m):
    return ((v + m - 1) // m) * m


def _mlp_softmax_kernel(x_ref, w1_ref, b1_ref, w2_ref, b2_ref, w3_ref, b3_ref,
                        o_ref):
    x = x_ref[...]  # [TB, num_inputs] float32

    # Linear(num_inputs, 5) + ReLU
    h1 = jnp.dot(x, w1_ref[...], preferred_element_type=jnp.float32) + b1_ref[...]
    h1 = jnp.maximum(h1, 0.0)

    # Linear(5, 20) + ReLU
    h2 = jnp.dot(h1, w2_ref[...], preferred_element_type=jnp.float32) + b2_ref[...]
    h2 = jnp.maximum(h2, 0.0)

    # Linear(20, nc_pad). Pad columns carry a -1e30 bias so they get exactly
    # zero probability mass and contribute nothing to the denominator.
    logits = jnp.dot(h2, w3_ref[...], preferred_element_type=jnp.float32) + b3_ref[...]

    # Dropout(p=0.3): eval-mode -> identity (see header comment).

    # Numerically stable softmax over the lane-dense (128-wide) class axis.
    # Row max stays on the XLU; the row sum is offloaded to the idle MXU.
    m = jnp.max(logits, axis=1, keepdims=True)
    e = jnp.exp(logits - m)
    ones_col = jnp.ones((e.shape[1], 1), jnp.float32)
    denom = jnp.dot(e, ones_col, preferred_element_type=jnp.float32)
    probs = e * pl.reciprocal(denom, approx=True)

    # Store only the real classes; padded lanes never touch HBM.
    o_ref[...] = probs[:, : o_ref.shape[1]].astype(o_ref.dtype)


def our_module_forward(x, params, *, block_batch=4096, out_dtype=jnp.float32,
                       vmem_budget_bytes=20 << 20):
    """x: [batch, num_inputs] float32; params: dict of (transposed) weights/biases.

    out_dtype=jnp.bfloat16 halves the output HBM stream on v6e/v7x if
    downstream code tolerates bf16 probabilities (default keeps f32 parity).
    """
    w1, b1, w2, b2, w3, b3 = (params["w1"], params["b1"], params["w2"],
                              params["b2"], params["w3"], params["b3"])
    batch, num_inputs = x.shape
    num_classes = w3.shape[1]

    # ---- Lane-dense *compute*: pad class dim of the last layer to 128. ------
    nc_pad = max(_LANE, _round_up(num_classes, _LANE))
    w3p = jnp.zeros((w3.shape[0], nc_pad), w3.dtype).at[:, :num_classes].set(w3)
    b3p = jnp.full((1, nc_pad), _NEG_BIG, b3.dtype).at[:, :num_classes].set(b3)

    # ---- Batch tile size (multiple of 8 sublanes). ---------------------------
    tb = _round_up(min(block_batch, batch), _SUBLANE)
    # v7x megacore: keep >=2 grid blocks when the batch would otherwise
    # collapse into a single block (no-op for huge batches or tiny ones).
    tb = min(tb, _round_up(pl.cdiv(batch, 2), _SUBLANE))
    # VMEM cap: double-buffered x/out tiles + ~4 nc_pad-wide f32 intermediates
    # per row; matters on v7x (64 MiB physical / 32 MiB scoped) for wide nc.
    per_row_bytes = (4 * (2 * num_inputs + 4 * nc_pad)
                     + 2 * num_classes * jnp.dtype(out_dtype).itemsize)
    max_rows = max(_SUBLANE,
                   (vmem_budget_bytes // per_row_bytes) // _SUBLANE * _SUBLANE)
    tb = min(tb, max_rows)

    # No host-side padding of x: Pallas handles the partial edge block and the
    # garbage rows in it are never written back.
    n_blocks = pl.cdiv(batch, tb)

    def resident(a):
        # Weights/biases: constant block index -> fetched once, stay resident.
        return pl.BlockSpec(a.shape, lambda i: (0,) * a.ndim)

    out_bytes = batch * num_classes * jnp.dtype(out_dtype).itemsize
    weight_bytes = sum(int(a.size) * a.dtype.itemsize
                       for a in (w1, b1, w2, b2, w3p, b3p))
    flops = int(2 * batch * (num_inputs * 5 + 5 * 20 + 20 * nc_pad + nc_pad))
    bytes_accessed = int(4 * batch * num_inputs + out_bytes + weight_bytes)
    transcendentals = int(batch * nc_pad)

    return pl.pallas_call(
        _mlp_softmax_kernel,
        out_shape=jax.ShapeDtypeStruct((batch, num_classes), out_dtype),
        grid=(n_blocks,),
        in_specs=[
            pl.BlockSpec((tb, num_inputs), lambda i: (i, 0)),   # x: streamed
            resident(w1), resident(b1),
            resident(w2), resident(b2),
            resident(w3p), resident(b3p),
        ],
        out_specs=pl.BlockSpec((tb, num_classes), lambda i: (i, 0)),
        compiler_params=pltpu.CompilerParams(
            dimension_semantics=("parallel",),
            vmem_limit_bytes=32 << 20),
        cost_estimate=pl.CostEstimate(
            flops=flops,
            transcendentals=transcendentals,
            bytes_accessed=bytes_accessed),
    )(x, w1, b1, w2, b2, w3p, b3p)


def init_params(key, num_inputs, num_classes):
    """Deterministic synthetic init (uniform, PyTorch-Linear-like fan-in bound)."""
    ks = jax.random.split(key, 6)

    def linear(kw, kb, fan_in, fan_out):
        bound = 1.0 / jnp.sqrt(jnp.float32(fan_in))
        # stored as [in, out] (transposed vs. torch's [out, in])
        w = jax.random.uniform(kw, (fan_in, fan_out), jnp.float32, -bound, bound)
        b = jax.random.uniform(kb, (1, fan_out), jnp.float32, -bound, bound)
        return w, b

    w1, b1 = linear(ks[0], ks[1], num_inputs, 5)
    w2, b2 = linear(ks[2], ks[3], 5, 20)
    w3, b3 = linear(ks[4], ks[5], 20, num_classes)
    return {"w1": w1, "b1": b1, "w2": w2, "b2": b2, "w3": w3, "b3": b3}


def _reference_forward(x, params):
    h1 = jnp.maximum(x @ params["w1"] + params["b1"], 0.0)
    h2 = jnp.maximum(h1 @ params["w2"] + params["b2"], 0.0)
    logits = h2 @ params["w3"] + params["b3"]
    return jax.nn.softmax(logits, axis=1)


if __name__ == "__main__":
    key = jax.random.PRNGKey(0)
    k_x, k_p = jax.random.split(key)

    batch = 4
    num_inputs = 32
    num_classes = 10

    x = jax.random.normal(k_x, (batch, num_inputs), dtype=jnp.float32)
    params = init_params(k_p, num_inputs, num_classes)

    out = our_module_forward(x, params)
    out = jax.block_until_ready(out)

    # sanity: shape, rows sum to 1, matches pure-JAX reference
    assert out.shape == (batch, num_classes)
    assert jnp.allclose(jnp.sum(out, axis=1), 1.0, atol=1e-2)
    ref = _reference_forward(x, params)
    assert jnp.allclose(out, ref, atol=1e-2)

    print("KERNEL_OK")
</pallas_src>

<mosaic_0001>
module attributes {stable_mosaic.version = 11 : i64} {
  func.func @_mlp_softmax_kernel(%arg0: i32, %arg1: memref<8x32xf32, #tpu.memory_space<vmem>>, %arg2: memref<32x5xf32, #tpu.memory_space<vmem>>, %arg3: memref<1x5xf32, #tpu.memory_space<vmem>>, %arg4: memref<5x20xf32, #tpu.memory_space<vmem>>, %arg5: memref<1x20xf32, #tpu.memory_space<vmem>>, %arg6: memref<20x128xf32, #tpu.memory_space<vmem>>, %arg7: memref<1x128xf32, #tpu.memory_space<vmem>>, %arg8: memref<8x10xf32, #tpu.memory_space<vmem>>) attributes {dimension_semantics = [#tpu.dimension_semantics<parallel>], iteration_bounds = array<i64: 1>, scalar_prefetch = 0 : i64, scratch_operands = 0 : i64, tpu.core_type = #tpu.core_type<tc>, window_params = [{transform_indices = @transform_0, window_bounds = array<i64: 8, 32>}, {pipeline_mode = #tpu.pipeline_mode<synchronous>, transform_indices = @transform_1, window_bounds = array<i64: 32, 5>}, {pipeline_mode = #tpu.pipeline_mode<synchronous>, transform_indices = @transform_2, window_bounds = array<i64: 1, 5>}, {pipeline_mode = #tpu.pipeline_mode<synchronous>, transform_indices = @transform_3, window_bounds = array<i64: 5, 20>}, {pipeline_mode = #tpu.pipeline_mode<synchronous>, transform_indices = @transform_4, window_bounds = array<i64: 1, 20>}, {pipeline_mode = #tpu.pipeline_mode<synchronous>, transform_indices = @transform_5, window_bounds = array<i64: 20, 128>}, {pipeline_mode = #tpu.pipeline_mode<synchronous>, transform_indices = @transform_6, window_bounds = array<i64: 1, 128>}, {transform_indices = @transform_7, window_bounds = array<i64: 8, 10>}]} {
    %c0 = arith.constant 0 : index
    %c0_0 = arith.constant 0 : index
    %0 = vector.load %arg1[%c0, %c0_0] : memref<8x32xf32, #tpu.memory_space<vmem>>, vector<8x32xf32>
    %c0_1 = arith.constant 0 : index
    %c0_2 = arith.constant 0 : index
    %1 = vector.load %arg2[%c0_1, %c0_2] : memref<32x5xf32, #tpu.memory_space<vmem>>, vector<32x5xf32>
    %cst = arith.constant dense<0.000000e+00> : vector<8x5xf32>
    %2 = tpu.matmul %0, %1, %cst {dimension_numbers = #tpu.dot_dimension_numbers<[1], [0], [0], [1], [0, 0, 1, 1], [], []>} : vector<8x32xf32>, vector<32x5xf32>, vector<8x5xf32> -> vector<8x5xf32>
    %c0_3 = arith.constant 0 : index
    %c0_4 = arith.constant 0 : index
    %3 = vector.load %arg3[%c0_3, %c0_4] : memref<1x5xf32, #tpu.memory_space<vmem>>, vector<1x5xf32>
    %4 = vector.broadcast %3 : vector<1x5xf32> to vector<8x5xf32>
    %5 = arith.addf %2, %4 : vector<8x5xf32>
    %cst_5 = arith.constant 0.000000e+00 : f32
    %6 = vector.broadcast %cst_5 : f32 to vector<8x5xf32>
    %7 = arith.maximumf %5, %6 : vector<8x5xf32>
    %c0_6 = arith.constant 0 : index
    %c0_7 = arith.constant 0 : index
    %8 = vector.load %arg4[%c0_6, %c0_7] : memref<5x20xf32, #tpu.memory_space<vmem>>, vector<5x20xf32>
    %cst_8 = arith.constant dense<0.000000e+00> : vector<8x20xf32>
    %9 = tpu.matmul %7, %8, %cst_8 {dimension_numbers = #tpu.dot_dimension_numbers<[1], [0], [0], [1], [0, 0, 1, 1], [], []>} : vector<8x5xf32>, vector<5x20xf32>, vector<8x20xf32> -> vector<8x20xf32>
    %c0_9 = arith.constant 0 : index
    %c0_10 = arith.constant 0 : index
    %10 = vector.load %arg5[%c0_9, %c0_10] : memref<1x20xf32, #tpu.memory_space<vmem>>, vector<1x20xf32>
    %11 = vector.broadcast %10 : vector<1x20xf32> to vector<8x20xf32>
    %12 = arith.addf %9, %11 : vector<8x20xf32>
    %cst_11 = arith.constant 0.000000e+00 : f32
    %13 = vector.broadcast %cst_11 : f32 to vector<8x20xf32>
    %14 = arith.maximumf %12, %13 : vector<8x20xf32>
    %c0_12 = arith.constant 0 : index
    %c0_13 = arith.constant 0 : index
    %15 = vector.load %arg6[%c0_12, %c0_13] : memref<20x128xf32, #tpu.memory_space<vmem>>, vector<20x128xf32>
    %cst_14 = arith.constant dense<0.000000e+00> : vector<8x128xf32>
    %16 = tpu.matmul %14, %15, %cst_14 {dimension_numbers = #tpu.dot_dimension_numbers<[1], [0], [0], [1], [0, 0, 1, 1], [], []>} : vector<8x20xf32>, vector<20x128xf32>, vector<8x128xf32> -> vector<8x128xf32>
    %c0_15 = arith.constant 0 : index
    %c0_16 = arith.constant 0 : index
    %17 = vector.load %arg7[%c0_15, %c0_16] : memref<1x128xf32, #tpu.memory_space<vmem>>, vector<1x128xf32>
    %18 = vector.broadcast %17 : vector<1x128xf32> to vector<8x128xf32>
    %19 = arith.addf %16, %18 : vector<8x128xf32>
    %cst_17 = arith.constant dense<0xFF800000> : vector<8xf32>
    %20 = vector.multi_reduction <maximumf>, %19, %cst_17 [1] : vector<8x128xf32> to vector<8xf32>
    %21 = vector.shape_cast %20 : vector<8xf32> to vector<8x1xf32>
    %22 = vector.broadcast %21 : vector<8x1xf32> to vector<8x128xf32>
    %23 = arith.subf %19, %22 : vector<8x128xf32>
    %24 = math.exp %23 : vector<8x128xf32>
    %cst_18 = arith.constant 1.000000e+00 : f32
    %25 = vector.broadcast %cst_18 : f32 to vector<128x1xf32>
    %cst_19 = arith.constant dense<0.000000e+00> : vector<8x1xf32>
    %26 = tpu.matmul %24, %25, %cst_19 {dimension_numbers = #tpu.dot_dimension_numbers<[1], [0], [0], [1], [0, 0, 1, 1], [], []>} : vector<8x128xf32>, vector<128x1xf32>, vector<8x1xf32> -> vector<8x1xf32>
    %27 = tpu.reciprocal %26 {approx = true} : vector<8x1xf32> -> vector<8x1xf32>
    %28 = vector.broadcast %27 : vector<8x1xf32> to vector<8x128xf32>
    %29 = arith.mulf %24, %28 : vector<8x128xf32>
    %30 = vector.extract_strided_slice %29 {offsets = [0, 0], sizes = [8, 10], strides = [1, 1]} : vector<8x128xf32> to vector<8x10xf32>
    %c0_20 = arith.constant 0 : index
    %c0_21 = arith.constant 0 : index
    %31 = vector.load %arg8[%c0_20, %c0_21] : memref<8x10xf32, #tpu.memory_space<vmem>>, vector<8x10xf32>
    tpu.vector_store %arg8[%c0_20, %c0_21], %30 {strides = array<i32>} : memref<8x10xf32, #tpu.memory_space<vmem>>, vector<8x10xf32>,
    return
  }
  func.func @transform_0(%arg0: i32) -> (i32, i32) {
    %c0_i32 = arith.constant 0 : i32
    %c0_i32_0 = arith.constant 0 : i32
    return %arg0, %c0_i32 : i32, i32
  }
  func.func @transform_1(%arg0: i32) -> (i32, i32) {
    %c0_i32 = arith.constant 0 : i32
    %c0_i32_0 = arith.constant 0 : i32
    %c0_i32_1 = arith.constant 0 : i32
    return %c0_i32, %c0_i32_0 : i32, i32
  }
  func.func @transform_2(%arg0: i32) -> (i32, i32) {
    %c0_i32 = arith.constant 0 : i32
    %c0_i32_0 = arith.constant 0 : i32
    %c0_i32_1 = arith.constant 0 : i32
    return %c0_i32, %c0_i32_0 : i32, i32
  }
  func.func @transform_3(%arg0: i32) -> (i32, i32) {
    %c0_i32 = arith.constant 0 : i32
    %c0_i32_0 = arith.constant 0 : i32
    %c0_i32_1 = arith.constant 0 : i32
    return %c0_i32, %c0_i32_0 : i32, i32
  }
  func.func @transform_4(%arg0: i32) -> (i32, i32) {
    %c0_i32 = arith.constant 0 : i32
    %c0_i32_0 = arith.constant 0 : i32
    %c0_i32_1 = arith.constant 0 : i32
    return %c0_i32, %c0_i32_0 : i32, i32
  }
  func.func @transform_5(%arg0: i32) -> (i32, i32) {
    %c0_i32 = arith.constant 0 : i32
    %c0_i32_0 = arith.constant 0 : i32
    %c0_i32_1 = arith.constant 0 : i32
    return %c0_i32, %c0_i32_0 : i32, i32
  }
  func.func @transform_6(%arg0: i32) -> (i32, i32) {
    %c0_i32 = arith.constant 0 : i32
    %c0_i32_0 = arith.constant 0 : i32
    %c0_i32_1 = arith.constant 0 : i32
    return %c0_i32, %c0_i32_0 : i32, i32
  }
  func.func @transform_7(%arg0: i32) -> (i32, i32) {
    %c0_i32 = arith.constant 0 : i32
    %c0_i32_0 = arith.constant 0 : i32
    return %arg0, %c0_i32 : i32, i32
  }
}

</mosaic_0001>

<bundles_post_ra>
// kernel: tpu_custom_call.1
= control target key start
LH: loop header
LB: loop body
LE: loop exit
PB: predicated region body
PF: predicated region fallthrough
CT: control target
= control target key end

     0   :  { %12 = vsyncpa [#allocation3], 0  ;;  %v547_v2 = vmov 0.0|0.0   ;;  %vm548_vm0 = vmmov 0   ;;  %v549_v6 = vmov 0.0   ;;  %vm39_vm1 = vcmask 261120   ;;  %s647_s0 = inlined_call_operand.vmem [shape: f32[4,32], index: 0, kind: input, shape index: {}]   ;;  %s648_s1 = inlined_call_operand.vmem [shape: f32[32,5], index: 1, kind: input, shape index: {}]   ;;  %s649_s2 = inlined_call_operand.vmem [shape: f32[1,5], index: 2, kind: input, shape index: {}]   ;;  %s650_s3 = inlined_call_operand.vmem [shape: f32[5,20], index: 3, kind: input, shape index: {}]   ;;  %s651_s4 = inlined_call_operand.vmem [shape: f32[1,20], index: 4, kind: input, shape index: {}]   ;;  %s652_s5 = inlined_call_operand.vmem [shape: f32[20,128], index: 5, kind: input, shape index: {}]   ;;  %s653_s6 = inlined_call_operand.vmem [shape: f32[1,128], index: 6, kind: input, shape index: {}]   ;;  %s654_s7 = inlined_call_operand.hbm [shape: f32[4,10], index: 7, kind: output, shape index: {}]  }
   0x1   :  { %v28_v0 = vld [vmem:[%s648_s1] sm:$0xff]  ;;  %v29_v1 = vld [vmem:[%s648_s1 + $0x8] sm:$0xff]  ;;  %485 = vmatprep.subr.bf16.mxu1 %v547_v2  ;;  %v30_v4 = vld [vmem:[%s648_s1 + $0x10] sm:$0xff]  ;;  %494 = vmatprep.subr.bf16.mxu0 %v547_v2  ;;  %vm126_vm2 = vcmask 1044480   ;;  %vm122_vm3 = vcmask 39936   ;;  %vm215_vm4 = vcmask 1043456  }
   0x2   :  { %v486_v3 = vpack.c.bf16 %v29_v1, %v28_v0  ;;  %v31_v5 = vld [vmem:[%s648_s1 + $0x18] sm:$0xff]  ;;  %433 = vmatprep.mubr.msk.f32.mxu1 %vm548_vm0, %v549_v6  ;;  %482 = vmatprep.mubr.msk.f32.mxu0 %vm548_vm0, %v549_v6  ;;  %v27_v8 = vld [vmem:[%s647_s0] sm:$0xff]  ;;  %v202_v12 = vld [vmem:[%s652_s5 + $0x8] sm:$0xff]  ;;  %vm211_vm5 = vcmask 162816   ;;  %v550_v24 = vmov 1.0|1.0  }
   0x3   :  { %v489_v7 = vpack.c.bf16 %v31_v5, %v30_v4  ;;  %v114_v9 = vld [vmem:[%s650_s3] sm:$0x1f]  ;;  %v203_v18 = vld [vmem:[%s652_s5 + $0x10] sm:$0xf]  ;;  %495 = vmatpush3.bf16.msra.mxu0 %v550_v24  ;;  %v551_v33 = vmov 0   ;;  %vm371_vm6 = vcmask 80896  }
   0x4   :  { %487 = vmatpush3.bf16.msra.mxu1 %v486_v3  ;;  %v389_v10 = vld [vmem:[%s649_s2] ss:$0 sm:$0xff]  ;;  %496 = vmatprep.subr.bf16.mxu0 %v547_v2 }
   0x5   :  { %488 = vmatprep.subr.bf16.mxu1 %v547_v2  ;;  %v201_v11 = vld [vmem:[%s652_s5] sm:$0xff]  ;;  %518 = vset.pattern.permute.xlu0 %v551_v33 }
   0x6   :  { %v492_v16 = vpack.c.bf16 %v202_v12, %v201_v11  ;;  %v391_v19 = vld [vmem:[%s651_s4] ss:$0 sm:$0xff] }
   0x7   :  { %497 = vmatpush3.bf16.msra.mxu0 %v550_v24  ;;  %v394_v25 = vld [vmem:[%s653_s6] ss:$0 sm:$0xff] }
   0x8   :  { %490 = vmatpush3.bf16.msra.mxu1 %v489_v7  ;;  %498 = vmatprep.subr.bf16.mxu0 %v547_v2 }
   0x9   :  { %436 = vmatprep.subr.mxu1 %v549_v6 }
   0xb   :  { %434 = vmatmul.mubr.msk.f32.vlgmr.msra.gmra.mrb[0].mxu1 %vm39_vm1, %v27_v8  ;;  %499 = vmatpush3.bf16.msra.mxu0 %v550_v24 }
   0xc   :  { %438 = vmatprep.mubr.msk.f32.mxu1 %vm548_vm0, %v549_v6  ;;  %437 = vmatpush3.msk.msra.mxu1 %vm126_vm2, %v114_v9 }
   0xd   :  { %491 = vmatprep.subr.bf16.mxu1 %v547_v2  ;;  %500 = vmatprep.subr.bf16.mxu0 %v547_v2 }
   0xf   :  { %501 = vmatpush3.bf16.msra.mxu0 %v550_v24 }
  0x10   :  { %502 = vmatprep.subr.bf16.mxu0 %v547_v2 }
  0x13   :  { %503 = vmatpush3.bf16.msra.mxu0 %v550_v24 }
  0x14   :  { %504 = vmatprep.subr.bf16.mxu0 %v547_v2 }
  0x17   :  { %505 = vmatpush3.bf16.msra.mxu0 %v550_v24 }
  0x18   :  { %506 = vmatprep.subr.bf16.mxu0 %v547_v2 }
  0x1b   :  { %507 = vmatpush3.bf16.msra.mxu0 %v550_v24 }
  0x1c   :  { %508 = vmatprep.subr.bf16.mxu0 %v547_v2 }
  0x1f   :  { %509 = vmatpush3.bf16.msra.mxu0 %v550_v24 }
  0xde   :  { %v109_v13 = vpop.f32.mrb[0].mxu1 }
  0xdf   :  { %v110_v14 = vadd.f32 %v389_v10, %v109_v13  ;;  %v435_v15 = vpop.f32.mrb[1].mxu1 }
  0xe1   :  { %v113_v17 = vmax.f32 %v110_v14, 0.0 }
  0xe3   :  { %439 = vmatmul.mubr.msk.f32.vlgmr.msra.gmra.mrb[2].mxu1 %vm122_vm3, %v113_v17 }
  0xe4   :  { %493 = vmatpush3.bf16.msra.mxu1 %v492_v16  ;;  %447 = vmatprep.mubr.msk.f32.mxu1 %vm548_vm0, %v549_v6 }
  0xe5   :  { %445 = vmatprep.subr.mxu1 %v549_v6 }
  0xe8   :  { %446 = vmatpush3.msk.msra.mxu1 %vm215_vm4, %v203_v18 }
 0x1b6   :  { %v196_v20 = vpop.f32.mrb[2].mxu1 }
 0x1b7   :  { %v197_v21 = vadd.f32 %v391_v19, %v196_v20  ;;  %v440_v22 = vpop.f32.mrb[3].mxu1 }
 0x1b9   :  { %v200_v23 = vmax.f32 %v197_v21, 0.0 }
 0x1bb   :  { %448 = vmatmul.mubr.msk.f32.vlgmr.msra.gmra.mrb[4].mxu1 %vm211_vm5, %v200_v23 }
 0x28e   :  { %v285_v26 = vpop.f32.mrb[4].mxu1 }
 0x28f   :  { %v286_v27 = vadd.f32 %v394_v25, %v285_v26  ;;  %v449_v28 = vpop.f32.mrb[5].mxu1 }
 0x291   :  { %289 = vmax.xlane.f32.xlu0 %v286_v27 }
 0x31e   :  { %v290_v29 = vpop.xlane.xlu0 %289 }
 0x31f   :  { %v291_v30 = vsub.f32 %v286_v27, %v290_v29 }
 0x321   :  { %v292_v31 = vmul.f32 1.442695, %v291_v30 }
 0x323   :  { %519 = vpow2.f32 %v292_v31 }
 0x32d   :  { %v520_v32 = vpop.eup %519 }
 0x32e   :  { %483 = vmatmul.mubr.f32.vlgmr.msra.gmra.mrb[0].mxu0 %v520_v32 }
 0x401   :  { %v360_v34 = vpop.f32.mrb[0].mxu0 }
 0x402   :  { %521 = vrcp.f32 %v360_v34  ;;  %v484_v35 = vpop.f32.mrb[1].mxu0 }
 0x40c   :  { %v522_v36 = vpop.eup %521 }
 0x40d   :  { %367 = vperm.xlu0 %518, %v522_v36  }
 0x48c   :  { %v368_v37 = vpop.permute.xlu0 %367 }
 0x48d   :  { %v370_v38 = vmul.f32 %v520_v32, %v368_v37 }
 0x48f   :  { %372 = vst.msk [vmem:[#allocation2] sm:$0xff] %vm371_vm6, %v370_v38 }
 0x490   :  { %377 = vsyncadd [#allocation3], 64  ;;  %s552_s6 = smov [#allocation2]  }
 0x491   :  { %s378_s19 = sshll.u32 %s552_s6, 4  ;;  %s379_s19 = int_to_ptr.vmem [resolvable:$true] %s378_s19 }
 0x492   :  { %s523_s20 = scalar_lea.vmem %s379_s19, 64  ;;  %s527_s21 = scalar_lea.vmem %s379_s19, 128 }
 0x493   :  { %p524_p0 = scmp.ne.s32.totalorder %s379_s19, %s523_s20  ;;  %p528_p1 = scmp.lt.s32.totalorder %s379_s19, %s379_s19 }
 0x494   :  { %p529_p2 = scmp.lt.s32.totalorder %s527_s21, %s523_s20 }
 0x496   :  { %p530_p3 = por %p529_p2, %p528_p1 }
 0x498   :  { %p531_p4 = pnand %p530_p3, %p524_p0 }
 0x49a   :  { %534 = shalt.err (!%p531_p4)
}
 0x49b   :  { %s535_s24 = scalar_lea.hbm %s654_s7, 64 }
 0x49c   :  { %p536_p5 = scmp.ne.s32.totalorder %s654_s7, %s535_s24  ;;  %p539_p6 = scmp.lt.u32.totalorder %s535_s24, %s654_s7 }
 0x49e   :  { %p541_p7 = pnand %p539_p6, %p536_p5 }
 0x4a0   :  { %544 = shalt.err (!%p541_p7)
}
 0x4a1   :  { %s553_s29 = smov 64   ;;  %s554_s30 = smov 4  }
 0x4a2   :  { %384 = dma.vmem_to_hbm [thread:$0]  %s379_s19, 64, %s654_s7, [#allocation3], %s553_s29, %s553_s29, %s554_s30  }
 0x4a3   :  { %545 = dma.done.wait [#allocation3], 128  }
 0x4a4   :  { %546 = vsyncadd [#allocation3], 4294967168 }
 0x4a5   :  { %388 = vsyncpa [#allocation3], 1 }

</bundles_post_ra>
